<compile_context>
chip_gen: v7x
topology: tpu7x:2x2x1
jax: 0.10.0
libtpu: 0.0.40
codegen_flags: <defaults>
</compile_context>

<pallas_src>
import jax
import jax.numpy as jnp
from jax.experimental import pallas as pl
from jax.experimental.pallas import tpu as pltpu


def _linear_kernel(x_ref, wt_ref, b_ref, o_ref):
    # x_ref: (tile_m, d_inp), wt_ref: (d_inp, d_model), b_ref: (1, d_model),
    # o_ref: (tile_m, d_model).  f32 accumulation on the MXU, bias add on VPU.
    acc = jnp.dot(x_ref[...], wt_ref[...], preferred_element_type=jnp.float32)
    o_ref[...] = (acc + b_ref[...]).astype(o_ref.dtype)


def _round_up(v, m):
    return ((v + m - 1) // m) * m


_VMEM_BUDGET = 12 * 1024 * 1024     # conservative: fits v5e's 16 MiB default scoped VMEM
_TARGET_OUT_TILE = 4 * 1024 * 1024  # ~4 MiB output tile per buffer amortizes ~0.35us/step


def _desired_tile_m(d_model, out_bytes, sublane, user_tile_m):
    # Per-row, per-step VMEM bytes: the (tile_m, 6) f32 x block is lane-padded
    # to 128 lanes in VMEM (double buffered) + the output block (double
    # buffered).  Weight/bias are KB-scale and ignored.
    per_row = 2 * (128 * 4 + d_model * out_bytes)
    cap = max(sublane, (_VMEM_BUDGET // per_row) // sublane * sublane)
    target = max(sublane,
                 (_TARGET_OUT_TILE // max(1, d_model * out_bytes)) // sublane * sublane)
    desired = min(cap, target)
    if user_tile_m is not None:
        desired = min(cap, max(sublane, _round_up(int(user_tile_m), sublane)))
    return desired


def _pick_divisor_tile(M, desired, sublane):
    """Largest multiple-of-`sublane` divisor of M that is <= desired.

    Prefers an even grid (M // t even) when it costs at most 2x more steps,
    for balanced megacore sharding on v7x (2 TensorCores / chip).
    """
    best = None
    best_even = None
    t = sublane
    limit = min(desired, M)
    while t <= limit:
        if M % t == 0:
            best = t
            if (M // t) % 2 == 0:
                best_even = t
        t += sublane
    if best is None:
        return None
    if best_even is not None and 2 * best_even >= best:
        return best_even
    return best


def time_feature_embedding(x, weight, bias, *, tile_m=None, out_dtype=None):
    """TimeFeatureEmbedding forward: y = x @ weight.T + bias.

    x: (B, L, d_inp) f32, weight: (d_model, d_inp), bias: (d_model,).
    Returns (B, L, d_model) in out_dtype (defaults to x.dtype).
    """
    B, L, d_inp = x.shape
    d_model, d_inp_w = weight.shape
    assert d_inp_w == d_inp, "weight shape must be (d_model, d_inp)"
    out_dtype = x.dtype if out_dtype is None else jnp.dtype(out_dtype)
    out_bytes = jnp.dtype(out_dtype).itemsize
    # Sublane granularity: 8 for 4-byte, 16 for 2-byte, 32 for 1-byte outputs
    # (f32 input imposes a lower bound of 8).
    sublane = max(8, 32 // out_bytes)

    M = B * L
    x2d = x.reshape(M, d_inp)

    desired = _desired_tile_m(d_model, out_bytes, sublane, tile_m)
    tm = _pick_divisor_tile(M, desired, sublane)
    if tm is not None:
        Mp = M
    else:
        # Fallback: pad rows (costs one extra pass over the output for the
        # [:M] slice); only hit when M has no multiple-of-sublane divisor.
        tm = min(desired, _round_up(M, sublane))
        Mp = _round_up(M, tm)
        x2d = jnp.pad(x2d, ((0, Mp - M), (0, 0)))

    wt = weight.T                    # (d_inp, d_model), VMEM-resident
    b2d = bias.reshape(1, d_model)   # (1, d_model),     VMEM-resident

    grid = (Mp // tm,)
    cost = pl.CostEstimate(
        flops=2 * Mp * d_inp * d_model,
        transcendentals=0,
        bytes_accessed=(Mp * d_inp * x.dtype.itemsize
                        + d_inp * d_model * weight.dtype.itemsize
                        + d_model * bias.dtype.itemsize
                        + Mp * d_model * out_bytes),
    )

    out2d = pl.pallas_call(
        _linear_kernel,
        out_shape=jax.ShapeDtypeStruct((Mp, d_model), out_dtype),
        grid_spec=pltpu.PrefetchScalarGridSpec(
            num_scalar_prefetch=0,
            grid=grid,
            in_specs=[
                # x: streamed row tiles (auto double-buffered by Pallas).
                pl.BlockSpec((tm, d_inp), lambda i: (i, 0)),
                # weight / bias: constant index map -> stay VMEM-resident.
                pl.BlockSpec((d_inp, d_model), lambda i: (0, 0)),
                pl.BlockSpec((1, d_model), lambda i: (0, 0)),
            ],
            out_specs=pl.BlockSpec((tm, d_model), lambda i: (i, 0)),
        ),
        compiler_params=pltpu.CompilerParams(
            dimension_semantics=("parallel",)),
        cost_estimate=cost,
    )(x2d, wt, b2d)

    if Mp != M:
        out2d = out2d[:M]
    return out2d.reshape(B, L, d_model)


if __name__ == "__main__":
    key = jax.random.PRNGKey(0)

    def make_case(k, B, L, d_model, d_inp=6):
        kx, kw, kb = jax.random.split(k, 3)
        xx = jax.random.normal(kx, (B, L, d_inp), dtype=jnp.float32)
        bound = 1.0 / (d_inp ** 0.5)
        ww = jax.random.uniform(kw, (d_model, d_inp), jnp.float32, -bound, bound)
        bb = jax.random.uniform(kb, (d_model,), jnp.float32, -bound, bound)
        return xx, ww, bb

    k1, k2 = jax.random.split(key)

    # Case 1: module-sized shapes (d_inp=6 fixed by the module).
    x, w, b = make_case(k1, 2, 8, 32)
    out = jax.block_until_ready(time_feature_embedding(x, w, b))
    ref = jnp.einsum("bld,md->blm", x, w) + b
    assert out.shape == (2, 8, 32)
    assert jnp.allclose(out, ref, atol=1e-5, rtol=1e-5)

    # Case 2: multi-tile path + row-pad fallback (M = 3*7 = 21, no mult-of-8 divisor).
    x, w, b = make_case(k2, 3, 7, 96)
    out = jax.block_until_ready(time_feature_embedding(x, w, b, tile_m=8))
    ref = jnp.einsum("bld,md->blm", x, w) + b
    assert out.shape == (3, 7, 96)
    assert jnp.allclose(out, ref, atol=1e-5, rtol=1e-5)

    print("KERNEL_OK")
</pallas_src>

<mosaic_0001>
module attributes {stable_mosaic.version = 11 : i64} {
  func.func @_linear_kernel(%arg0: i32, %arg1: memref<8x6xf32, #tpu.memory_space<vmem>>, %arg2: memref<6x32xf32, #tpu.memory_space<vmem>>, %arg3: memref<1x32xf32, #tpu.memory_space<vmem>>, %arg4: memref<8x32xf32, #tpu.memory_space<vmem>>) attributes {dimension_semantics = [#tpu.dimension_semantics<parallel>], iteration_bounds = array<i64: 2>, scalar_prefetch = 0 : i64, scratch_operands = 0 : i64, tpu.core_type = #tpu.core_type<tc>, window_params = [{transform_indices = @transform_0, window_bounds = array<i64: 8, 6>}, {pipeline_mode = #tpu.pipeline_mode<synchronous>, transform_indices = @transform_1, window_bounds = array<i64: 6, 32>}, {pipeline_mode = #tpu.pipeline_mode<synchronous>, transform_indices = @transform_2, window_bounds = array<i64: 1, 32>}, {transform_indices = @transform_3, window_bounds = array<i64: 8, 32>}]} {
    %c0 = arith.constant 0 : index
    %c0_0 = arith.constant 0 : index
    %0 = vector.load %arg1[%c0, %c0_0] : memref<8x6xf32, #tpu.memory_space<vmem>>, vector<8x6xf32>
    %c0_1 = arith.constant 0 : index
    %c0_2 = arith.constant 0 : index
    %1 = vector.load %arg2[%c0_1, %c0_2] : memref<6x32xf32, #tpu.memory_space<vmem>>, vector<6x32xf32>
    %cst = arith.constant dense<0.000000e+00> : vector<8x32xf32>
    %2 = tpu.matmul %0, %1, %cst {dimension_numbers = #tpu.dot_dimension_numbers<[1], [0], [0], [1], [0, 0, 1, 1], [], []>} : vector<8x6xf32>, vector<6x32xf32>, vector<8x32xf32> -> vector<8x32xf32>
    %c0_3 = arith.constant 0 : index
    %c0_4 = arith.constant 0 : index
    %3 = vector.load %arg3[%c0_3, %c0_4] : memref<1x32xf32, #tpu.memory_space<vmem>>, vector<1x32xf32>
    %4 = vector.broadcast %3 : vector<1x32xf32> to vector<8x32xf32>
    %5 = arith.addf %2, %4 : vector<8x32xf32>
    %c0_5 = arith.constant 0 : index
    %c0_6 = arith.constant 0 : index
    %6 = vector.load %arg4[%c0_5, %c0_6] : memref<8x32xf32, #tpu.memory_space<vmem>>, vector<8x32xf32>
    tpu.vector_store %arg4[%c0_5, %c0_6], %5 {strides = array<i32>} : memref<8x32xf32, #tpu.memory_space<vmem>>, vector<8x32xf32>,
    return
  }
  func.func @transform_0(%arg0: i32) -> (i32, i32) {
    %c0_i32 = arith.constant 0 : i32
    %c0_i32_0 = arith.constant 0 : i32
    return %arg0, %c0_i32 : i32, i32
  }
  func.func @transform_1(%arg0: i32) -> (i32, i32) {
    %c0_i32 = arith.constant 0 : i32
    %c0_i32_0 = arith.constant 0 : i32
    %c0_i32_1 = arith.constant 0 : i32
    return %c0_i32, %c0_i32_0 : i32, i32
  }
  func.func @transform_2(%arg0: i32) -> (i32, i32) {
    %c0_i32 = arith.constant 0 : i32
    %c0_i32_0 = arith.constant 0 : i32
    %c0_i32_1 = arith.constant 0 : i32
    return %c0_i32, %c0_i32_0 : i32, i32
  }
  func.func @transform_3(%arg0: i32) -> (i32, i32) {
    %c0_i32 = arith.constant 0 : i32
    %c0_i32_0 = arith.constant 0 : i32
    return %arg0, %c0_i32 : i32, i32
  }
}

</mosaic_0001>

<bundles_post_ra>
// kernel: tpu_custom_call.1
= control target key start
LH: loop header
LB: loop body
LE: loop exit
PB: predicated region body
PF: predicated region fallthrough
CT: control target
= control target key end

     0   :  { %8 = vsyncpa [#allocation3], 0  ;;  %s582_s0 = inlined_call_operand.vmem [shape: f32[16,6], index: 0, kind: input, shape index: {}]   ;;  %s583_s1 = inlined_call_operand.vmem [shape: f32[6,32], index: 1, kind: input, shape index: {}]   ;;  %s584_s2 = inlined_call_operand.vmem [shape: f32[1,32], index: 2, kind: input, shape index: {}]   ;;  %s585_s3 = inlined_call_operand.hbm [shape: f32[16,32], index: 3, kind: output, shape index: {}]  }
   0x1   :  { %10 = vsyncpa [#allocation3 + $0x1], 0  ;;  %s476_s12 = smov 0   ;;  %s478_s13 = smov 0  }
   0x2   :  { %s480_s14 = smov 0   ;;  %s482_s15 = smov 0  }
   0x3 LB: > { %s497_s16 = sadd.s32 4294967295, %s451_s15   ;;  %s328_s17 = sadd.s32 4294967294, %s451_s15   ;;  %s451_s15 = sphi %s482_s15, %s591_s15   ;;  %s447_s14 = sphi %s480_s14, %s590_s14   ;;  %s443_s13 = sphi %s478_s13, %s589_s13   ;;  %s439_s12 = sphi %s476_s12, %s588_s12  }
   0x4   : > { %s501_s18 = sadd.s32 1, %s451_s15   ;;  %s91_s19 = sadd.s32 1, %s447_s14 }
   0x5   : > { %s88_s20 = ssub.s32 %s451_s15, %s501_s18  ;;  %p101_p0 = scmp.ne.s32.totalorder %s447_s14, %s443_s13 }
   0x6   : > { %p89_p1 = scmp.eq.s32.totalorder %s88_s20, 0  ;;  %p102_p2 = scmp.eq.s32.totalorder %s497_s16, 1 }
   0x7   : > { %p107_p3 = scmp.ne.s32.totalorder %s443_s13, %s439_s12  ;;  %p108_p4 = scmp.eq.s32.totalorder %s328_s17, 1 }
   0x8   : > { %s512_s21 = scalar_select %p89_p1, %s447_s14, %s91_s19  }
   0x9   : > { %p514_p5 = por %p102_p2, %p101_p0  ;;  %p518_p6 = por %p108_p4, %p107_p3 }
   0xa   : > { %p331_p7 = scmp.ge.s32.totalorder %s451_s15, 1  ;;  %p139_p8 = scmp.lt.s32.totalorder %s451_s15, 3 }
   0xc   : > { %p140_p9 = pnand %p331_p7, %p139_p8 }
   0xd   : > { %v167_v0 = vld [vmem:[%s583_s1] sm:$0x3f] (!%p140_p9)  ;;  %vm179_vm0 = vcmask (!%p140_p9), 1045504   ;;  %p162_p10 = scmp.lt.s32.totalorder (!%p140_p9), %s497_s16, 1  ;;  %v453_v1 = vmov (!%p140_p9), 0.0   ;;  %vm454_vm1 = vmmov (!%p140_p9), 0  }
   0xe   : > { %143 = sbr.rel (%p140_p9) target bundleno = 254 (0xfe), region = 32  ;;  %343 = vmatprep.subr.mxu0 (!%p140_p9), %v453_v1  ;;  %345 = vmatprep.mubr.msk.f32.mxu0 (!%p140_p9), %vm454_vm1, %v453_v1  ;;  %vm175_vm2 = vcmask (!%p140_p9), 48128   ;;  %s159_s4 = sand.u32 (!%p140_p9), 1, %s443_s13   ;;  %v334_v3 = vld [vmem:[%s584_s2] ss:$0 sm:$0xff] (!%p140_p9)  ;;  %vm253_vm3 = vcmask (!%p140_p9), 261120  }
   0xf   : > { %344 = vmatpush3.msk.msra.mxu0 (!%p140_p9), %vm179_vm0, %v167_v0  ;;  %s332_s5 = sshll.u32 (!%p140_p9), %s159_s4, 3  ;;  %s338_s8 = sshll.u32 (!%p140_p9), %s497_s16, 7 }
  0x10   : > { %s161_s9 = scalar_lea.vmem (!%p140_p9), [#allocation2], %s332_s5  ;;  %s540_s19 = scalar_lea.hbm (!%p140_p9), %s585_s3, %s338_s8 }
  0x11   : > { %s269_s10 = sshll.u32 (!%p140_p9), %s161_s9, 4  ;;  %s256_s20 = scalar_lea.sflag (!%p140_p9), [#allocation3], %s159_s4  ;;  %s542_s10 = int_to_ptr.vmem [resolvable:$true] %s269_s10 }
  0x12   : > { %s389_s24 = scalar_lea.vmem (!%p140_p9), %s542_s10, 128 }
  0x13   : > { %p390_p11 = scmp.ne.s32.totalorder (!%p140_p9), %s542_s10, %s389_s24 }
  0x15   : > { %s163_s26 = scalar_select %p162_p10, %s497_s16, 1 }
  0x16   : > { %p391_p12 = pnand %p390_p11, %p514_p5  ;;  %s455_s16 = smov [#allocation2]  }
  0x17   : > { %s333_s27 = sshll.u32 %s163_s26, 3  ;;  %s393_s25 = sshll.u32 %s455_s16, 4  ;;  %s394_s25 = int_to_ptr.vmem [resolvable:$false] %s393_s25 }
  0x18   : > { %s165_s30 = scalar_lea.vmem %s582_s0, %s333_s27  ;;  %p392_p13 = pneg %p391_p12 }
  0x19   : > { %v166_v2 = vld [vmem:[%s165_s30] sm:$0xff]  ;;  %s395_s26 = scalar_lea.vmem %s394_s25, 256  ;;  %p396_p0 = scmp.lt.s32.totalorder %s542_s10, %s394_s25 }
  0x1a   : > { %346 = vmatmul.mubr.msk.f32.vlgmr.msra.gmra.mrb[0].mxu0 %vm175_vm2, %v166_v2  ;;  %p397_p1 = scmp.lt.s32.totalorder %s395_s26, %s389_s24 }
  0x1c   : > { %p398_p2 = por %p397_p1, %p396_p0 }
  0x1e   : > { %p399_p3 = pnand %p398_p2, %p392_p13 }
  0xed   : > { %v249_v4 = vpop.f32.mrb[0].mxu0 }
  0xee   : > { %v250_v5 = vadd.f32 %v334_v3, %v249_v4  ;;  %v347_v6 = vpop.f32.mrb[1].mxu0 }
  0xf0   : > { %254 = vst.msk [vmem:[%s161_s9] sm:$0xff] %vm253_vm3, %v250_v5 }
  0xf1   : > { %402 = shalt.err (!%p399_p3)
}
  0xf2   : > { %s403_s27 = scalar_lea.hbm %s540_s19, 128  ;;  %s407_s30 = scalar_lea.hbm %s585_s3, 256 }
  0xf3   : > { %p404_p4 = scmp.ne.s32.totalorder %s540_s19, %s403_s27  ;;  %p408_p9 = scmp.lt.u32.totalorder %s540_s19, %s585_s3 }
  0xf4   : > { %p409_p10 = scmp.lt.u32.totalorder %s407_s30, %s403_s27  ;;  %p411_p12 = scmp.lt.u32.totalorder %s403_s27, %s540_s19 }
  0xf5   : > { %p405_p7 = pnand %p404_p4, %p514_p5 }
  0xf6   : > { %p410_p11 = por %p409_p10, %p408_p9 }
  0xf7   : > { %p406_p8 = pneg %p405_p7 }
  0xf8   : > { %p412_p13 = por %p411_p12, %p410_p11 }
  0xfa   : > { %p413_p0 = pnand %p412_p13, %p406_p8 }
  0xfc   : > { %416 = shalt.err (!%p413_p0)
}
  0xfd   : > { %348 = dma.vmem_to_hbm [thread:$0]  (%p514_p5), %s542_s10, 128, %s540_s19, %s256_s20  }
  0xfe PF: > { %p354_p1 = scmp.ge.s32.totalorder %s451_s15, 2  ;;  %s281_s6 = sand.u32 1, %s439_s12  }
  0xff   : > { %s282_s7 = scalar_lea.sflag [#allocation3], %s281_s6 }
 0x100   : > { %p351_p2 = pnand %p354_p1, %p518_p6 }
 0x102   : > { %434 = dma.done.wait (!%p351_p2), %s282_s7, 128  }
 0x103   : > { %436 = vsyncadd (!%p351_p2), %s282_s7, 4294967168  ;;  %p13_p3 = scmp.ge.s32.totalorder %s501_s18, 4   ;;  %s588_s12 = smov %s443_s13 }
 0x104   : > { %s589_s13 = smov %s447_s14  ;;  %s590_s14 = smov %s512_s21 }
 0x105   : > { %s591_s15 = smov %s501_s18  ;;  %15 = sbr.rel (!%p13_p3) target bundleno = 3 (0x3), region = 67 }
 0x10c   :  { %287 = vsyncpa [#allocation3], 1 }
 0x10d   :  { %289 = vsyncpa [#allocation3 + $0x1], 1 }

</bundles_post_ra>
